<compile_context>
chip_gen: v5e
topology: v5e:2x2
jax: 0.10.0
libtpu: 0.0.40
codegen_flags: <defaults>
</compile_context>

<pallas_src>
import jax
import jax.numpy as jnp
from jax.experimental import pallas as pl
from jax.experimental.pallas import tpu as pltpu


def _linear_add_scalar_kernel(x_ref, w_ref, b_ref, other_ref, o_ref):
    # x_ref:     (K,)   SMEM   flattened input row
    # w_ref:     (K,)   SMEM   flattened Linear weight (out_features == 1)
    # b_ref:     (1,)   SMEM   linear bias scalar
    # other_ref: (1,)   SMEM   broadcast `other` scalar
    # o_ref:     (1, 1) SMEM   scalar output
    K = x_ref.shape[0]
    # Re-associated epilogue: one scalar add for (bias + other) up front.
    acc = b_ref[0] + other_ref[0]
    # Fully unrolled K-term scalar multiply-add (K == 11, static Python loop).
    for k in range(K):
        acc = acc + x_ref[k] * w_ref[k]
    o_ref[0, 0] = acc


def linear_add(x, weight, bias, other):
    """y = x @ weight.T + bias + other  (PyTorch Linear semantics).

    x:      (B, K) float32   with B == 1
    weight: (N, K) float32   PyTorch Linear weight layout, N == 1
    bias:   (N,)   float32
    other:  (1,)   float32   (numel == 1, broadcasts over the output)
    returns (B, N) float32
    """
    B, K = x.shape
    N, K2 = weight.shape
    assert B == 1 and N == 1 and K2 == K, "synthetic model: (1, K) x, out_features == 1"
    assert other.size == 1, "this model's `other` must have numel == 1"

    return pl.pallas_call(
        _linear_add_scalar_kernel,
        out_shape=jax.ShapeDtypeStruct((B, N), jnp.float32),
        in_specs=[
            pl.BlockSpec(memory_space=pltpu.SMEM),   # x, flattened (K,)
            pl.BlockSpec(memory_space=pltpu.SMEM),   # weight, flattened (K,)
            pl.BlockSpec(memory_space=pltpu.SMEM),   # bias (1,)
            pl.BlockSpec(memory_space=pltpu.SMEM),   # other (1,)
        ],
        out_specs=pl.BlockSpec(memory_space=pltpu.SMEM),
    )(
        x.reshape(K),
        weight.reshape(K),
        bias.reshape(1),
        other.reshape(1),
    )


if __name__ == "__main__":
    key = jax.random.PRNGKey(0)
    k1, k2, k3, k4 = jax.random.split(key, 4)

    B, K, N = 1, 11, 1

    # Deterministic "parameters" (PyTorch-like uniform init bound 1/sqrt(K)).
    bound = 1.0 / (K ** 0.5)
    weight = jax.random.uniform(k1, (N, K), jnp.float32, -bound, bound)
    bias = jax.random.uniform(k2, (N,), jnp.float32, -bound, bound)

    # Inputs matching the module: input_tensor (1, 11), other (1,)
    x = jax.random.normal(k3, (B, K), jnp.float32)
    other = jax.random.normal(k4, (1,), jnp.float32)

    y = linear_add(x, weight, bias, other)
    y = jax.block_until_ready(y)

    # Reference check in plain JAX.
    y_ref = x @ weight.T + bias + other
    assert y.shape == (B, N)
    assert jnp.allclose(y, y_ref, atol=1e-5, rtol=1e-5), (y, y_ref)

    print("KERNEL_OK")
</pallas_src>

<mosaic_0001>
module attributes {stable_mosaic.version = 11 : i64} {
  func.func @_linear_add_scalar_kernel(%arg0: memref<11xf32, #tpu.memory_space<smem>>, %arg1: memref<11xf32, #tpu.memory_space<smem>>, %arg2: memref<1xf32, #tpu.memory_space<smem>>, %arg3: memref<1xf32, #tpu.memory_space<smem>>, %arg4: memref<1x1xf32, #tpu.memory_space<smem>>) attributes {dimension_semantics = [], scalar_prefetch = 0 : i64, scratch_operands = 0 : i64, tpu.core_type = #tpu.core_type<tc>} {
    %c0 = arith.constant 0 : index
    %0 = memref.load %arg2[%c0] : memref<1xf32, #tpu.memory_space<smem>>
    %c0_0 = arith.constant 0 : index
    %1 = memref.load %arg3[%c0_0] : memref<1xf32, #tpu.memory_space<smem>>
    %2 = arith.addf %0, %1 : f32
    %c0_1 = arith.constant 0 : index
    %3 = memref.load %arg0[%c0_1] : memref<11xf32, #tpu.memory_space<smem>>
    %c0_2 = arith.constant 0 : index
    %4 = memref.load %arg1[%c0_2] : memref<11xf32, #tpu.memory_space<smem>>
    %5 = arith.mulf %3, %4 : f32
    %6 = arith.addf %2, %5 : f32
    %c1 = arith.constant 1 : index
    %7 = memref.load %arg0[%c1] : memref<11xf32, #tpu.memory_space<smem>>
    %c1_3 = arith.constant 1 : index
    %8 = memref.load %arg1[%c1_3] : memref<11xf32, #tpu.memory_space<smem>>
    %9 = arith.mulf %7, %8 : f32
    %10 = arith.addf %6, %9 : f32
    %c2 = arith.constant 2 : index
    %11 = memref.load %arg0[%c2] : memref<11xf32, #tpu.memory_space<smem>>
    %c2_4 = arith.constant 2 : index
    %12 = memref.load %arg1[%c2_4] : memref<11xf32, #tpu.memory_space<smem>>
    %13 = arith.mulf %11, %12 : f32
    %14 = arith.addf %10, %13 : f32
    %c3 = arith.constant 3 : index
    %15 = memref.load %arg0[%c3] : memref<11xf32, #tpu.memory_space<smem>>
    %c3_5 = arith.constant 3 : index
    %16 = memref.load %arg1[%c3_5] : memref<11xf32, #tpu.memory_space<smem>>
    %17 = arith.mulf %15, %16 : f32
    %18 = arith.addf %14, %17 : f32
    %c4 = arith.constant 4 : index
    %19 = memref.load %arg0[%c4] : memref<11xf32, #tpu.memory_space<smem>>
    %c4_6 = arith.constant 4 : index
    %20 = memref.load %arg1[%c4_6] : memref<11xf32, #tpu.memory_space<smem>>
    %21 = arith.mulf %19, %20 : f32
    %22 = arith.addf %18, %21 : f32
    %c5 = arith.constant 5 : index
    %23 = memref.load %arg0[%c5] : memref<11xf32, #tpu.memory_space<smem>>
    %c5_7 = arith.constant 5 : index
    %24 = memref.load %arg1[%c5_7] : memref<11xf32, #tpu.memory_space<smem>>
    %25 = arith.mulf %23, %24 : f32
    %26 = arith.addf %22, %25 : f32
    %c6 = arith.constant 6 : index
    %27 = memref.load %arg0[%c6] : memref<11xf32, #tpu.memory_space<smem>>
    %c6_8 = arith.constant 6 : index
    %28 = memref.load %arg1[%c6_8] : memref<11xf32, #tpu.memory_space<smem>>
    %29 = arith.mulf %27, %28 : f32
    %30 = arith.addf %26, %29 : f32
    %c7 = arith.constant 7 : index
    %31 = memref.load %arg0[%c7] : memref<11xf32, #tpu.memory_space<smem>>
    %c7_9 = arith.constant 7 : index
    %32 = memref.load %arg1[%c7_9] : memref<11xf32, #tpu.memory_space<smem>>
    %33 = arith.mulf %31, %32 : f32
    %34 = arith.addf %30, %33 : f32
    %c8 = arith.constant 8 : index
    %35 = memref.load %arg0[%c8] : memref<11xf32, #tpu.memory_space<smem>>
    %c8_10 = arith.constant 8 : index
    %36 = memref.load %arg1[%c8_10] : memref<11xf32, #tpu.memory_space<smem>>
    %37 = arith.mulf %35, %36 : f32
    %38 = arith.addf %34, %37 : f32
    %c9 = arith.constant 9 : index
    %39 = memref.load %arg0[%c9] : memref<11xf32, #tpu.memory_space<smem>>
    %c9_11 = arith.constant 9 : index
    %40 = memref.load %arg1[%c9_11] : memref<11xf32, #tpu.memory_space<smem>>
    %41 = arith.mulf %39, %40 : f32
    %42 = arith.addf %38, %41 : f32
    %c10 = arith.constant 10 : index
    %43 = memref.load %arg0[%c10] : memref<11xf32, #tpu.memory_space<smem>>
    %c10_12 = arith.constant 10 : index
    %44 = memref.load %arg1[%c10_12] : memref<11xf32, #tpu.memory_space<smem>>
    %45 = arith.mulf %43, %44 : f32
    %46 = arith.addf %42, %45 : f32
    %c0_13 = arith.constant 0 : index
    %c0_14 = arith.constant 0 : index
    %47 = memref.load %arg4[%c0_13, %c0_14] : memref<1x1xf32, #tpu.memory_space<smem>>
    memref.store %46, %arg4[%c0_13, %c0_14] : memref<1x1xf32, #tpu.memory_space<smem>>
    return
  }
}

</mosaic_0001>

<bundles_post_ra>
// kernel: tpu_custom_call.1
= control target key start
LH: loop header
LB: loop body
LE: loop exit
PB: predicated region body
PF: predicated region fallthrough
CT: control target
= control target key end

     0   :  { %11 = vsyncpa [#allocation6], 0  ;;  %s219_s0 = inlined_call_operand.vmem [shape: f32[11], index: 0, kind: input, shape index: {}]   ;;  %s220_s1 = inlined_call_operand.vmem [shape: f32[11], index: 1, kind: input, shape index: {}]   ;;  %s221_s2 = inlined_call_operand.<no memory space> [shape: f32[1], index: 2, kind: input, shape index: {}]   ;;  %s222_s3 = inlined_call_operand.<no memory space> [shape: f32[1], index: 3, kind: input, shape index: {}]   ;;  %s223_s4 = inlined_call_operand.hbm [shape: f32[1,1], index: 4, kind: output, shape index: {}]  }
   0x1   :  { %12 = vsyncpa [#allocation8], 0 }
   0x2   :  { %13 = vsyncpa [#allocation5], 0  ;;  %s19_s17 = sshll.u32 %s219_s0, 4  ;;  %s28_s20 = sshll.u32 %s220_s1, 4  ;;  %s20_s17 = int_to_ptr.vmem [resolvable:$true] %s19_s17  ;;  %s29_s20 = int_to_ptr.vmem [resolvable:$true] %s28_s20 }
   0x3   :  { %s176_s21 = smov [#allocation4]   ;;  %s177_s22 = smov [#allocation7]  }
   0x4   :  { %22 = dma.vmem_to_smem %s20_s17, 16, %s176_s21, [#allocation6]  }
   0x5   :  { %31 = dma.vmem_to_smem %s29_s20, 16, %s177_s22, [#allocation8]  }
   0x6   :  { %170 = dma.done.wait [#allocation6], 16  }
   0x7   :  { %171 = vsyncadd [#allocation6], 4294967280 }
   0x8   :  { %172 = dma.done.wait [#allocation8], 16  }
   0x9   :  { %173 = vsyncadd [#allocation8], 4294967280 }
   0xa   :  { %44 = sfence }
   0xb   :  { %s47_s26 = sadd.f32 %s222_s3, %s221_s2 }
   0xc   :  { %s48_s27 = sld [smem:[#allocation4]] }
   0xd   :  { %s49_s28 = sld [smem:[#allocation7]] }
   0xe   :  { %s111_s1 = sld [smem:[#allocation4 + $0x1]] }
   0xf   :  { %s112_s29 = sld [smem:[#allocation7 + $0x1]] }
  0x10   :  { %s113_s30 = sld [smem:[#allocation4 + $0x2]] }
  0x11   :  { %s114_s5 = sld [smem:[#allocation7 + $0x2]] }
  0x12   :  { %s115_s6 = sld [smem:[#allocation4 + $0x3]] }
  0x13   :  { %s50_s7 = smul.f32 %s49_s28, %s48_s27  ;;  %s116_s8 = sld [smem:[#allocation7 + $0x3]] }
  0x14   :  { %s117_s9 = sld [smem:[#allocation4 + $0x4]] }
  0x15   :  { %s51_s10 = sadd.f32 %s50_s7, %s47_s26  ;;  %s54_s11 = smul.f32 %s112_s29, %s111_s1 }
  0x16   :  { %s118_s12 = sld [smem:[#allocation7 + $0x4]] }
  0x17   :  { %s55_s13 = sadd.f32 %s54_s11, %s51_s10  ;;  %s58_s14 = smul.f32 %s114_s5, %s113_s30 }
  0x18   :  { %s119_s15 = sld [smem:[#allocation4 + $0x5]] }
  0x19   :  { %s59_s16 = sadd.f32 %s58_s14, %s55_s13  ;;  %s62_s17 = smul.f32 %s116_s8, %s115_s6 }
  0x1a   :  { %s120_s18 = sld [smem:[#allocation7 + $0x5]]  ;;  %s99_s13 = sshll.u32 %s223_s4, 4  ;;  %s100_s13 = int_to_ptr.hbm [resolvable:$true] %s99_s13 }
  0x1b   :  { %s63_s2 = sadd.f32 %s62_s17, %s59_s16  ;;  %s178_s17 = smov [#allocation9]  }
  0x1c   :  { %s66_s3 = smul.f32 %s118_s12, %s117_s9  ;;  %s121_s19 = sld [smem:[#allocation4 + $0x6]] }
  0x1d   :  { %s122_s20 = sld [smem:[#allocation7 + $0x6]] }
  0x1e   :  { %s67_s21 = sadd.f32 %s66_s3, %s63_s2 }
  0x1f   :  { %s123_s22 = sld [smem:[#allocation4 + $0x7]] }
  0x20   :  { %s70_s23 = smul.f32 %s120_s18, %s119_s15  ;;  %s124_s24 = sld [smem:[#allocation7 + $0x7]] }
  0x21   :  { %s125_s25 = sld [smem:[#allocation4 + $0x8]] }
  0x22   :  { %s71_s0 = sadd.f32 %s70_s23, %s67_s21 }
  0x23   :  { %s74_s27 = smul.f32 %s122_s20, %s121_s19  ;;  %s126_s26 = sld [smem:[#allocation7 + $0x8]] }
  0x24   :  { %s127_s28 = sld [smem:[#allocation4 + $0x9]] }
  0x25   :  { %s75_s1 = sadd.f32 %s74_s27, %s71_s0 }
  0x26   :  { %s78_s29 = smul.f32 %s124_s24, %s123_s22  ;;  %s128_s30 = sld [smem:[#allocation7 + $0x9]] }
  0x27   :  { %s129_s5 = sld [smem:[#allocation4 + $0xa]] }
  0x28   :  { %s79_s7 = sadd.f32 %s78_s29, %s75_s1 }
  0x29   :  { %s82_s6 = smul.f32 %s126_s26, %s125_s25  ;;  %s130_s8 = sld [smem:[#allocation7 + $0xa]] }
  0x2b   :  { %s83_s10 = sadd.f32 %s82_s6, %s79_s7 }
  0x2c   :  { %s86_s9 = smul.f32 %s128_s30, %s127_s28 }
  0x2e   :  { %s87_s14 = sadd.f32 %s86_s9, %s83_s10 }
  0x2f   :  { %s90_s15 = smul.f32 %s130_s8, %s129_s5 }
  0x31   :  { %s91_s16 = sadd.f32 %s90_s15, %s87_s14 }
  0x33   :  { %93 = sst [smem:[#allocation9]] %s91_s16 }
  0x34   :  { %102 = dma.smem_to_hbm %s178_s17, 16, %s100_s13, [#allocation5]  }
  0x35   :  { %174 = dma.done.wait [#allocation5], 16  }
  0x36   :  { %175 = vsyncadd [#allocation5], 4294967280 }
  0x37   :  { %107 = sfence }
  0x38   :  { %108 = vsyncpa [#allocation5], 1 }
  0x39   :  { %109 = vsyncpa [#allocation6], 1 }
  0x3a   :  { %110 = vsyncpa [#allocation8], 1 }

</bundles_post_ra>
